<compile_context>
chip_gen: v7x
topology: tpu7x:2x2x1
jax: 0.10.0
libtpu: 0.0.40
codegen_flags: <defaults>
</compile_context>

<pallas_src>
import functools

import jax
import jax.numpy as jnp
from jax.experimental import pallas as pl
from jax.experimental.pallas import tpu as pltpu


def _round_up(x, m):
    return (x + m - 1) // m * m


_VMEM_LIMIT_BYTES = 48 * 1024 * 1024   # > v5e's 16 MiB scoped default, < v7x's 64 MiB physical
_KRES_BUDGET_BYTES = 28 * 1024 * 1024  # double-buffered working-set budget for the K-resident path


# ---------------------------------------------------------------------------
# Kernels
# ---------------------------------------------------------------------------

def _mm_kres_kernel(x_ref, w_ref, b_ref, o_ref):
    """K-resident: full-K panels, one MXU pass per (i, j) output tile."""
    o_ref[...] = (
        jnp.dot(x_ref[...], w_ref[...], preferred_element_type=jnp.float32)
        + b_ref[...]
    ).astype(o_ref.dtype)


def _mm_ktiled_f32_kernel(x_ref, w_ref, b_ref, o_ref):
    """K-tiled, f32 output: accumulate directly into the resident output tile.

    Invariant: k (grid axis 2) must be the innermost grid axis and the output
    block index must be constant across k, so o_ref stays VMEM-resident for
    the whole reduction (no intermediate HBM writeback).
    """
    k = pl.program_id(2)

    @pl.when(k == 0)
    def _():
        o_ref[...] = jnp.zeros_like(o_ref)

    o_ref[...] += jnp.dot(x_ref[...], w_ref[...], preferred_element_type=jnp.float32)

    @pl.when(k == pl.num_programs(2) - 1)
    def _():
        o_ref[...] += b_ref[...]


def _mm_ktiled_acc_kernel(x_ref, w_ref, b_ref, o_ref, acc_ref):
    """K-tiled, low-precision output: f32 VMEM accumulator, cast at finalize."""
    k = pl.program_id(2)

    @pl.when(k == 0)
    def _():
        acc_ref[...] = jnp.zeros_like(acc_ref)

    acc_ref[...] += jnp.dot(x_ref[...], w_ref[...], preferred_element_type=jnp.float32)

    @pl.when(k == pl.num_programs(2) - 1)
    def _():
        o_ref[...] = (acc_ref[...] + b_ref[...]).astype(o_ref.dtype)


# ---------------------------------------------------------------------------
# Wrapper
# ---------------------------------------------------------------------------

@functools.partial(
    jax.jit,
    static_argnames=("tm", "tn", "tk", "out_dtype", "kres_budget"),
)
def _matmul_pallas_2d(x2d, matrix, bias2d, *, tm, tn, tk, out_dtype, kres_budget):
    M, K = x2d.shape
    _, N = matrix.shape
    isz = jnp.dtype(x2d.dtype).itemsize
    osz = jnp.dtype(out_dtype).itemsize

    gm = pl.cdiv(M, tm)
    gn = pl.cdiv(N, tn)

    cost = pl.CostEstimate(
        flops=2 * M * N * K,
        transcendentals=0,
        bytes_accessed=M * K * isz + K * N * isz + M * N * osz + N * 4,
    )
    cparams_kw = dict(vmem_limit_bytes=_VMEM_LIMIT_BYTES)

    # --- Path A: K fits in VMEM -> no reduction axis.
    # Grid is (j outer, i inner) so the W panel's block index (0, j) is
    # constant across the M sweep and W is DMA'd from HBM once per stripe.
    kres_bytes = 2 * ((tm * K + K * tn) * isz + tm * tn * osz + tn * 4)
    if kres_bytes <= kres_budget:
        return pl.pallas_call(
            _mm_kres_kernel,
            out_shape=jax.ShapeDtypeStruct((M, N), out_dtype),
            grid=(gn, gm),
            in_specs=[
                pl.BlockSpec((tm, K), lambda j, i: (i, 0)),
                pl.BlockSpec((K, tn), lambda j, i: (0, j)),
                pl.BlockSpec((1, tn), lambda j, i: (0, j)),
            ],
            out_specs=pl.BlockSpec((tm, tn), lambda j, i: (i, j)),
            compiler_params=pltpu.CompilerParams(
                dimension_semantics=("parallel", "parallel"), **cparams_kw
            ),
            cost_estimate=cost,
        )(x2d, matrix, bias2d)

    # --- Path B: K-tiled reduction with k as the innermost ("arbitrary") axis.
    # Only K is zero-padded (garbage along K would corrupt valid outputs);
    # M/N edge blocks read garbage that is discarded on write, so no M/N pad
    # and no output slice copy.
    Kp = _round_up(K, tk)
    if Kp != K:
        x2d = jnp.pad(x2d, ((0, 0), (0, Kp - K)))
        matrix = jnp.pad(matrix, ((0, Kp - K), (0, 0)))

    common = dict(
        out_shape=jax.ShapeDtypeStruct((M, N), out_dtype),
        grid=(gm, gn, Kp // tk),
        in_specs=[
            pl.BlockSpec((tm, tk), lambda i, j, k: (i, k)),
            pl.BlockSpec((tk, tn), lambda i, j, k: (k, j)),
            pl.BlockSpec((1, tn), lambda i, j, k: (0, j)),
        ],
        out_specs=pl.BlockSpec((tm, tn), lambda i, j, k: (i, j)),
        compiler_params=pltpu.CompilerParams(
            dimension_semantics=("parallel", "parallel", "arbitrary"), **cparams_kw
        ),
        cost_estimate=cost,
    )

    if jnp.dtype(out_dtype) == jnp.float32:
        # f32 output: accumulate directly into the resident output tile.
        return pl.pallas_call(_mm_ktiled_f32_kernel, **common)(x2d, matrix, bias2d)
    # Low-precision output: keep an f32 scratch accumulator.
    return pl.pallas_call(
        _mm_ktiled_acc_kernel,
        scratch_shapes=[pltpu.VMEM((tm, tn), jnp.float32)],
        **common,
    )(x2d, matrix, bias2d)


def matmul_pallas(
    x,
    matrix,
    bias=None,
    *,
    tm=512,
    tn=512,
    tk=1024,
    cast_operands_to_bf16=False,
    kres_budget_bytes=_KRES_BUDGET_BYTES,
):
    """Equivalent of MatMul.forward: x @ matrix (+ bias)."""
    in_ch, out_ch = matrix.shape
    orig_shape = x.shape
    assert orig_shape[-1] == in_ch
    out_dtype = jnp.dtype(x.dtype)

    x2d = x.reshape(-1, in_ch)
    M = x2d.shape[0]

    if cast_operands_to_bf16:
        # Optional perf lever: bf16 MXU operands with f32 accumulation
        # (~2x less HBM/VMEM traffic, 3-4x higher MXU rate). Off by default
        # to preserve the torch module's f32 numerics.
        x2d = x2d.astype(jnp.bfloat16)
        matrix = matrix.astype(jnp.bfloat16)

    # Dtype-aware tile shrink so tiny problems don't over-tile:
    #  - second-minor (sublane) packing is 8/16/32 rows for 4/2/1-byte dtypes,
    #  - lane dims rounded to 256 when large enough to fill the 256-wide MXU
    #    on v6e/v7x (128 is enough for v5e's 128-wide MXU and small problems).
    isz = jnp.dtype(x2d.dtype).itemsize
    sublane = 8 * max(1, 4 // isz)
    n_unit = 256 if out_ch >= 256 else 128
    k_unit = 256 if in_ch >= 256 else 128

    tm = min(tm, _round_up(M, sublane))
    tn = min(tn, _round_up(out_ch, n_unit))
    tk = min(tk, _round_up(in_ch, k_unit))

    if bias is None:
        # use_bias=False: a zero bias is numerically identical; the (1, tn)
        # bias DMA + VPU add is negligible and hidden under the MXU.
        bias2d = jnp.zeros((1, out_ch), dtype=jnp.float32)
    else:
        bias2d = bias.reshape(1, out_ch).astype(jnp.float32)

    out2d = _matmul_pallas_2d(
        x2d, matrix, bias2d,
        tm=tm, tn=tn, tk=tk, out_dtype=out_dtype, kres_budget=kres_budget_bytes,
    )
    return out2d.reshape(*orig_shape[:-1], out_ch)


def init_matmul_params(key, in_channels, out_channels, use_bias=True):
    """Deterministic xavier_normal_ equivalent + zero bias."""
    std = (2.0 / (in_channels + out_channels)) ** 0.5
    matrix = std * jax.random.normal(key, (in_channels, out_channels), jnp.float32)
    bias = jnp.zeros((out_channels,), jnp.float32) if use_bias else None
    return matrix, bias


if __name__ == "__main__":
    batch, seq, in_ch, out_ch = 2, 8, 32, 64
    key = jax.random.PRNGKey(0)
    kx, kw = jax.random.split(key)

    x = jax.random.normal(kx, (batch, seq, in_ch), jnp.float32)
    matrix, bias = init_matmul_params(kw, in_ch, out_ch, use_bias=True)
    ref = jnp.matmul(x, matrix) + bias
    ref_nb = jnp.matmul(x, matrix)

    # With bias (K-resident path).
    out = jax.block_until_ready(matmul_pallas(x, matrix, bias))
    assert out.shape == (batch, seq, out_ch)
    assert jnp.allclose(out, ref, atol=1e-5, rtol=1e-5)

    # Without bias (use_bias=False path).
    out_nb = jax.block_until_ready(matmul_pallas(x, matrix, None))
    assert jnp.allclose(out_nb, ref_nb, atol=1e-5, rtol=1e-5)

    # Force the K-tiled reduction path (exercises zero-padded K, pl.when
    # init/finalize, and direct-into-o_ref f32 accumulation).
    out_kt = jax.block_until_ready(
        matmul_pallas(x, matrix, bias, kres_budget_bytes=0)
    )
    assert jnp.allclose(out_kt, ref, atol=1e-5, rtol=1e-5)

    print("KERNEL_OK")
</pallas_src>

<mosaic_0001>
module attributes {stable_mosaic.version = 11 : i64} {
  func.func @_mm_kres_kernel(%arg0: i32, %arg1: i32, %arg2: memref<16x32xf32, #tpu.memory_space<vmem>>, %arg3: memref<32x128xf32, #tpu.memory_space<vmem>>, %arg4: memref<1x128xf32, #tpu.memory_space<vmem>>, %arg5: memref<16x128xf32, #tpu.memory_space<vmem>>) attributes {dimension_semantics = [#tpu.dimension_semantics<parallel>, #tpu.dimension_semantics<parallel>], iteration_bounds = array<i64: 1, 1>, scalar_prefetch = 0 : i64, scratch_operands = 0 : i64, tpu.core_type = #tpu.core_type<tc>, window_params = [{transform_indices = @transform_0, window_bounds = array<i64: 16, 32>}, {transform_indices = @transform_1, window_bounds = array<i64: 32, 128>}, {transform_indices = @transform_2, window_bounds = array<i64: 1, 128>}, {transform_indices = @transform_3, window_bounds = array<i64: 16, 128>}]} {
    %c0 = arith.constant 0 : index
    %c0_0 = arith.constant 0 : index
    %0 = vector.load %arg2[%c0, %c0_0] : memref<16x32xf32, #tpu.memory_space<vmem>>, vector<16x32xf32>
    %c0_1 = arith.constant 0 : index
    %c0_2 = arith.constant 0 : index
    %1 = vector.load %arg3[%c0_1, %c0_2] : memref<32x128xf32, #tpu.memory_space<vmem>>, vector<32x128xf32>
    %cst = arith.constant dense<0.000000e+00> : vector<16x128xf32>
    %2 = tpu.matmul %0, %1, %cst {dimension_numbers = #tpu.dot_dimension_numbers<[1], [0], [0], [1], [0, 0, 1, 1], [], []>} : vector<16x32xf32>, vector<32x128xf32>, vector<16x128xf32> -> vector<16x128xf32>
    %c0_3 = arith.constant 0 : index
    %c0_4 = arith.constant 0 : index
    %3 = vector.load %arg4[%c0_3, %c0_4] : memref<1x128xf32, #tpu.memory_space<vmem>>, vector<1x128xf32>
    %4 = vector.broadcast %3 : vector<1x128xf32> to vector<16x128xf32>
    %5 = arith.addf %2, %4 : vector<16x128xf32>
    %c0_5 = arith.constant 0 : index
    %c0_6 = arith.constant 0 : index
    %6 = vector.load %arg5[%c0_5, %c0_6] : memref<16x128xf32, #tpu.memory_space<vmem>>, vector<16x128xf32>
    tpu.vector_store %arg5[%c0_5, %c0_6], %5 {strides = array<i32>} : memref<16x128xf32, #tpu.memory_space<vmem>>, vector<16x128xf32>,
    return
  }
  func.func @transform_0(%arg0: i32, %arg1: i32) -> (i32, i32) {
    %c0_i32 = arith.constant 0 : i32
    %c0_i32_0 = arith.constant 0 : i32
    return %arg1, %c0_i32 : i32, i32
  }
  func.func @transform_1(%arg0: i32, %arg1: i32) -> (i32, i32) {
    %c0_i32 = arith.constant 0 : i32
    %c0_i32_0 = arith.constant 0 : i32
    return %c0_i32, %arg0 : i32, i32
  }
  func.func @transform_2(%arg0: i32, %arg1: i32) -> (i32, i32) {
    %c0_i32 = arith.constant 0 : i32
    %c0_i32_0 = arith.constant 0 : i32
    return %c0_i32, %arg0 : i32, i32
  }
  func.func @transform_3(%arg0: i32, %arg1: i32) -> (i32, i32) {
    %c0_i32 = arith.constant 0 : i32
    return %arg1, %arg0 : i32, i32
  }
}

</mosaic_0001>

<bundles_post_ra>
// kernel: _matmul_pallas_2d.1
= control target key start
LH: loop header
LB: loop body
LE: loop exit
PB: predicated region body
PF: predicated region fallthrough
CT: control target
= control target key end

     0   :  { %8 = vsyncpa [#allocation3], 0  ;;  %s336_s0 = inlined_call_operand.hbm [shape: f32[16,32], index: 0, kind: input, shape index: {}]   ;;  %s337_s1 = inlined_call_operand.hbm [shape: f32[32,64], index: 1, kind: input, shape index: {}]   ;;  %s338_s2 = inlined_call_operand.vmem [shape: f32[1,64], index: 2, kind: input, shape index: {}]   ;;  %s339_s3 = inlined_call_operand.hbm [shape: f32[16,64], index: 3, kind: output, shape index: {}]  }
   0x1   :  { %9 = vsyncpa [#allocation6], 0 }
   0x2   :  { %10 = vsyncpa [#allocation4], 0  ;;  %s263_s12 = smov [#allocation2]   ;;  %s191_s16 = scalar_lea.hbm %s336_s0, 256 }
   0x3   :  { %s16_s13 = sshll.u32 %s263_s12, 4  ;;  %p192_p0 = scmp.ne.s32.totalorder %s336_s0, %s191_s16  ;;  %s17_s13 = int_to_ptr.vmem [resolvable:$true] %s16_s13 }
   0x4   :  { %p195_p1 = scmp.lt.u32.totalorder %s191_s16, %s336_s0 }
   0x6   :  { %p197_p2 = pnand %p195_p1, %p192_p0 }
   0x8   :  { %200 = shalt.err (!%p197_p2)
}
   0x9   :  { %s201_s21 = scalar_lea.vmem %s17_s13, 256  ;;  %p206_p4 = scmp.lt.s32.totalorder %s17_s13, %s17_s13 }
   0xa   :  { %p202_p3 = scmp.ne.s32.totalorder %s17_s13, %s201_s21  ;;  %p207_p5 = scmp.lt.s32.totalorder %s201_s21, %s201_s21 }
   0xc   :  { %p208_p6 = por %p207_p5, %p206_p4 }
   0xe   :  { %p209_p7 = pnand %p208_p6, %p202_p3 }
  0x10   :  { %212 = shalt.err (!%p209_p7)
}
  0x11   :  { %s264_s22 = smov 128   ;;  %s265_s23 = smov 8  }
  0x12   :  { %22 = dma.hbm_to_vmem [thread:$0]  %s336_s0, 256, %s17_s13, [#allocation3], %s264_s22, %s264_s22, %s265_s23  }
  0x13   :  { %s266_s26 = smov [#allocation5]   ;;  %s213_s30 = scalar_lea.hbm %s337_s1, 512 }
  0x14   :  { %s28_s27 = sshll.u32 %s266_s26, 4  ;;  %p214_p8 = scmp.ne.s32.totalorder %s337_s1, %s213_s30  ;;  %s29_s27 = int_to_ptr.vmem [resolvable:$true] %s28_s27 }
  0x15   :  { %p217_p9 = scmp.lt.u32.totalorder %s213_s30, %s337_s1 }
  0x17   :  { %p219_p10 = pnand %p217_p9, %p214_p8 }
  0x19   :  { %222 = shalt.err (!%p219_p10)
}
  0x1a   :  { %s223_s8 = scalar_lea.vmem %s29_s27, 512  ;;  %p228_p12 = scmp.lt.s32.totalorder %s29_s27, %s29_s27 }
  0x1b   :  { %p224_p11 = scmp.ne.s32.totalorder %s29_s27, %s223_s8  ;;  %p229_p13 = scmp.lt.s32.totalorder %s223_s8, %s223_s8 }
  0x1d   :  { %p230_p0 = por %p229_p13, %p228_p12 }
  0x1f   :  { %p231_p1 = pnand %p230_p0, %p224_p11 }
  0x21   :  { %234 = shalt.err (!%p231_p1)
}
  0x22   :  { %34 = dma.hbm_to_vmem [thread:$0]  %s337_s1, 512, %s29_s27, [#allocation6], %s264_s22, %s264_s22, %s265_s23  }
  0x23   :  { %257 = dma.done.wait [#allocation3], 256  }
  0x24   :  { %258 = vsyncadd [#allocation3], 4294967040 }
  0x25   :  { %259 = dma.done.wait [#allocation6], 512  }
  0x26   :  { %260 = vsyncadd [#allocation6], 4294966784  ;;  %vm56_vm0 = vcmask 261120   ;;  %v45_v0 = vld [vmem:[#allocation5] sm:$0xff]  ;;  %v46_v1 = vld [vmem:[#allocation5 + $0x8] sm:$0xff]  ;;  %s267_s11 = smov [#allocation7]  }
  0x27   :  { %v47_v2 = vld [vmem:[#allocation5 + $0x10] sm:$0xff]  ;;  %v178_v3 = vpack.c.bf16 %v46_v1, %v45_v0  ;;  %v48_v4 = vld [vmem:[#allocation5 + $0x18] sm:$0xff]  ;;  %s145_s12 = sshll.u32 %s267_s11, 4  ;;  %s146_s12 = int_to_ptr.vmem [resolvable:$true] %s145_s12 }
  0x28   :  { %v43_v5 = vld [vmem:[#allocation2] sm:$0xff]  ;;  %v182_v6 = vpack.c.bf16 %v48_v4, %v47_v2  ;;  %v44_v7 = vld [vmem:[#allocation2 + $0x8] sm:$0xff]  ;;  %s235_s13 = scalar_lea.vmem %s146_s12, 256  ;;  %p240_p3 = scmp.lt.s32.totalorder %s146_s12, %s146_s12 }
  0x29   :  { %175 = vmatprep.mubr.msk.f32.mxu0 %vm56_vm0, %v43_v5  ;;  %179 = vmatprep.subr.bf16.mxu0 %v178_v3  ;;  %v158_v8 = vld [vmem:[%s338_s2] ss:$0 sm:$0xff]  ;;  %p236_p2 = scmp.ne.s32.totalorder %s146_s12, %s235_s13  ;;  %p241_p4 = scmp.lt.s32.totalorder %s235_s13, %s235_s13 }
  0x2a   :  { %181 = vmatpush3.bf16.msra.mxu0 %v178_v3 }
  0x2b   :  { %183 = vmatprep.subr.bf16.mxu0 %v182_v6  ;;  %p242_p5 = por %p241_p4, %p240_p3 }
  0x2d   :  { %p243_p6 = pnand %p242_p5, %p236_p2 }
  0x2e   :  { %185 = vmatpush3.bf16.msra.mxu0 %v182_v6 }
  0x31   :  { %176 = vmatmul.mubr.msk.f32.vlgmr.msra.gmra.mrb[0].mxu0 %vm56_vm0, %v44_v7 }
 0x104   :  { %v177_v9 = vpop.f32.mrb[0].mxu0 }
 0x105   :  { %v135_v10 = vadd.f32 %v177_v9, %v158_v8  ;;  %v129_v11 = vpop.f32.mrb[1].mxu0 }
 0x106   :  { %v130_v12 = vadd.f32 %v158_v8, %v129_v11 }
 0x107   :  { %139 = vst [vmem:[#allocation7 + $0x8] sm:$0xff] %v135_v10 }
 0x108   :  { %138 = vst [vmem:[#allocation7] sm:$0xff] %v130_v12 }
 0x109   :  { %246 = shalt.err (!%p243_p6)
}
 0x10a   :  { %s247_s2 = scalar_lea.hbm %s339_s3, 256 }
 0x10b   :  { %p248_p7 = scmp.ne.s32.totalorder %s339_s3, %s247_s2  ;;  %p251_p8 = scmp.lt.u32.totalorder %s247_s2, %s339_s3 }
 0x10d   :  { %p253_p9 = pnand %p251_p8, %p248_p7 }
 0x10f   :  { %256 = shalt.err (!%p253_p9)
}
 0x110   :  { %151 = dma.vmem_to_hbm [thread:$0]  %s146_s12, 256, %s339_s3, [#allocation4], %s264_s22, %s264_s22, %s265_s23  }
 0x111   :  { %261 = dma.done.wait [#allocation4], 256  }
 0x112   :  { %262 = vsyncadd [#allocation4], 4294967040 }
 0x113   :  { %155 = vsyncpa [#allocation3], 1 }
 0x114   :  { %156 = vsyncpa [#allocation6], 1 }
 0x115   :  { %157 = vsyncpa [#allocation4], 1 }

</bundles_post_ra>
